<compile_context>
chip_gen: v6e
topology: v6e:2x2x1
jax: 0.10.0
libtpu: 0.0.40
codegen_flags: <defaults>
</compile_context>

<pallas_src>
import functools

import jax
import jax.numpy as jnp
import numpy as np
from jax import lax
from jax.experimental import pallas as pl
from jax.experimental.pallas import tpu as pltpu


def _round_up(x: int, m: int) -> int:
    return (x + m - 1) // m * m


# ---------------------------------------------------------------------------
# Pallas kernel
# ---------------------------------------------------------------------------
def _make_ist_kernel(seq_len: int, batch_pad: int, hidden: int,
                     tanh_pre: bool, tanh_post: bool):
    Bp = batch_pad
    H = hidden
    G = 3 * H          # per-direction fused gate width (r|z|n)
    G2 = 6 * H          # both directions fused along lanes

    def kernel(feat_ref, len_ref, maxlen_ref,
               wih_ref, bias_ref, whh_ref, bhn_f_ref, bhn_b_ref,
               tokens_ref, w_hist_ref, b_hist_ref, w_ctx_ref, b_ctx_ref,
               v_ref, bv_ref,
               emb_ref, att_ref,
               gx_ref):
        # ------------------------------------------------------------------
        # 1) Hoisted FUSED input projection: ONE bf16 matmul for all
        #    timesteps, all gates, both directions. Lane layout of gx:
        #    [r_f | z_f | n_f | r_b | z_b | n_b]. Input biases + recurrent
        #    r/z biases already folded into bias_ref; b_hn stays in the loop.
        # ------------------------------------------------------------------
        x = feat_ref[...]                                       # (T*Bp, F) bf16
        gx_ref[...] = (jnp.dot(x, wih_ref[...],
                               preferred_element_type=jnp.float32)
                       + bias_ref[...])                         # (T*Bp, 6H) f32

        lengths = len_ref[...]                                  # (Bp, 1) int32
        max_len = maxlen_ref[0]                                 # scalar int32

        # Loop invariants hoisted out of the recurrence.
        whh = whh_ref[...]                                      # (2H, 6H) bf16
        bhn_f = jnp.broadcast_to(bhn_f_ref[...], (Bp, H))       # (Bp, H) f32
        bhn_b = jnp.broadcast_to(bhn_b_ref[...], (Bp, H))       # (Bp, H) f32

        # ------------------------------------------------------------------
        # 2) Interleaved fwd/bwd recurrence, ONE block-diagonal matmul per
        #    step: carry h_cat = [h_f | h_b] (Bp, 2H),
        #    hh = h_cat @ whh_bd -> [h_f@whh_f | h_b@whh_b] (Bp, 6H).
        #    Trip count = min(max(len), T). Padded rows/steps frozen by mask.
        # ------------------------------------------------------------------
        def body(i, h_cat):
            hh = jnp.dot(h_cat.astype(jnp.bfloat16), whh,
                         preferred_element_type=jnp.float32)    # (Bp, 6H)
            tf = i
            tb = max_len - 1 - i
            off_f = pl.multiple_of(tf * Bp, Bp)
            off_b = pl.multiple_of(tb * Bp, Bp)
            gx_f = gx_ref[pl.ds(off_f, Bp), :]                  # fwd uses lanes 0:3H
            gx_b = gx_ref[pl.ds(off_b, Bp), :]                  # bwd uses lanes 3H:6H

            h_f = h_cat[:, 0:H]
            h_b = h_cat[:, H:2 * H]

            # Forward direction gates (r|z|n at lanes 0:3H).
            r_f = jax.nn.sigmoid(gx_f[:, 0:H] + hh[:, 0:H])
            z_f = jax.nn.sigmoid(gx_f[:, H:2 * H] + hh[:, H:2 * H])
            n_f = jnp.tanh(gx_f[:, 2 * H:G] + r_f * (hh[:, 2 * H:G] + bhn_f))
            hf_new = (1.0 - z_f) * n_f + z_f * h_f

            # Backward direction gates (r|z|n at lanes 3H:6H).
            r_b = jax.nn.sigmoid(gx_b[:, G:G + H] + hh[:, G:G + H])
            z_b = jax.nn.sigmoid(gx_b[:, G + H:G + 2 * H] + hh[:, G + H:G + 2 * H])
            n_b = jnp.tanh(gx_b[:, G + 2 * H:G2]
                           + r_b * (hh[:, G + 2 * H:G2] + bhn_b))
            hb_new = (1.0 - z_b) * n_b + z_b * h_b

            h_f = jnp.where(tf < lengths, hf_new, h_f)
            h_b = jnp.where(tb < lengths, hb_new, h_b)
            return jnp.concatenate([h_f, h_b], axis=-1)         # (Bp, 2H)

        # The final carry IS the context: cat([h[0], h[1]], dim=-1).
        context = lax.fori_loop(0, max_len, body,
                                jnp.zeros((Bp, 2 * H), jnp.float32))

        # ------------------------------------------------------------------
        # 3) Additive attention of context over tokens (f32, tiny).
        # ------------------------------------------------------------------
        tokens = tokens_ref[...]                                # (K, D)
        if tanh_pre:
            tokens = jnp.tanh(tokens)

        hp = jnp.dot(tokens, w_hist_ref[...],
                     preferred_element_type=jnp.float32) + b_hist_ref[...]  # (K, A)
        cp = jnp.dot(context, w_ctx_ref[...],
                     preferred_element_type=jnp.float32) + b_ctx_ref[...]   # (Bp, A)
        e = jnp.tanh(hp[None, :, :] + cp[:, None, :])           # (Bp, K, A)
        v = v_ref[...].reshape(1, 1, -1)                        # (1, 1, A)
        scores = jnp.sum(e * v, axis=-1) + bv_ref[...]          # (Bp, K)

        # Softmax over tokens (exact denominator: (Bp, K) is tiny).
        scores = scores - jnp.max(scores, axis=-1, keepdims=True)
        w = jnp.exp(scores)
        w = w / jnp.sum(w, axis=-1, keepdims=True)

        emb = jnp.dot(w, tokens, preferred_element_type=jnp.float32)  # (Bp, D)
        if tanh_post:
            emb = jnp.tanh(emb)

        emb_ref[...] = emb
        att_ref[...] = w

    return kernel


# ---------------------------------------------------------------------------
# Wrapper (glue: concat, transpose/pad/flatten, weight restacking, pallas_call)
# ---------------------------------------------------------------------------
@functools.partial(jax.jit, static_argnames=("use_deltas", "use_values",
                                             "tanh_pre", "tanh_post"))
def ist_one_shot_encoder(params, feature_deltas, feature_values, features_len,
                         use_deltas=True, use_values=True,
                         tanh_pre=True, tanh_post=True):
    feats = []
    if use_deltas:
        feats.append(feature_deltas)
    if use_values:
        feats.append(feature_values)
    features = jnp.concatenate(feats, axis=-1).astype(jnp.float32)   # (B, T, F)
    B, T, F = features.shape
    # Sublane-aligned batch tile. For B > 8, growing Bp toward 128 MXU rows is
    # nearly free (the recurrence is latency-bound) before any grid is needed.
    Bp = _round_up(B, 8)

    # Time-major, batch padded, flattened: the fused input projection is one
    # dense (T*Bp, F) matmul and every per-step slice is an aligned
    # 8-sublane window of the gx scratch.
    # TODO(synk): for very large T*B*F avoid this host-side transpose+pad
    #             round trip by streaming (T, Bp, F) chunks in-kernel.
    feat_tbf = jnp.transpose(features, (1, 0, 2))                    # (T, B, F)
    feat_tbf = jnp.pad(feat_tbf, ((0, 0), (0, Bp - B), (0, 0)))      # (T, Bp, F)
    feat2d = feat_tbf.reshape(T * Bp, F).astype(jnp.bfloat16)        # bf16 slab

    lens = features_len.astype(jnp.int32)
    lens_pad = jnp.pad(lens, (0, Bp - B)).reshape(Bp, 1)             # pad -> len 0
    # Clamp to T: no OOB dynamic slice on the gx scratch if len > T.
    max_len = jnp.minimum(jnp.max(lens), T).astype(jnp.int32).reshape(1)

    K, D = params["tokens"].shape
    H = D // 2

    def stack_dir(wih, whh, bih, bhh):
        # Stack gates (r|z|n) along lanes; fold b_ih(all) + b_hh(r, z).
        wih_s = jnp.concatenate([wih[0], wih[1], wih[2]], axis=1)    # (F, 3H)
        whh_s = jnp.concatenate([whh[0], whh[1], whh[2]], axis=1)    # (H, 3H)
        bias_s = jnp.concatenate([bih[0] + bhh[0],
                                  bih[1] + bhh[1],
                                  bih[2]], axis=1)                   # (1, 3H)
        return wih_s, whh_s, bias_s, bhh[2]                          # bhn (1, H)

    wih_f, whh_f, bias_f, bhn_f = stack_dir(params["wih_f"], params["whh_f"],
                                            params["bih_f"], params["bhh_f"])
    wih_b, whh_b, bias_b, bhn_b = stack_dir(params["wih_b"], params["whh_b"],
                                            params["bih_b"], params["bhh_b"])

    # Fuse both directions along lanes: one (F, 6H) input projection and one
    # block-diagonal (2H, 6H) recurrent matrix (zeros are free — MXU rows are
    # underfilled at Bp=8 anyway). Weights in bf16, biases stay f32.
    wih_all = jnp.concatenate([wih_f, wih_b], axis=1).astype(jnp.bfloat16)
    bias_all = jnp.concatenate([bias_f, bias_b], axis=1)             # (1, 6H) f32
    zeros = jnp.zeros((H, 3 * H), jnp.float32)
    whh_bd = jnp.concatenate(
        [jnp.concatenate([whh_f, zeros], axis=1),
         jnp.concatenate([zeros, whh_b], axis=1)],
        axis=0).astype(jnp.bfloat16)                                 # (2H, 6H)

    kernel = _make_ist_kernel(T, Bp, H, tanh_pre, tanh_post)
    vmem = pl.BlockSpec(memory_space=pltpu.MemorySpace.VMEM)
    smem = pl.BlockSpec(memory_space=pltpu.MemorySpace.SMEM)

    args = (feat2d, lens_pad, max_len,
            wih_all, bias_all, whh_bd, bhn_f, bhn_b,
            params["tokens"], params["w_hist"], params["b_hist"],
            params["w_ctx"], params["b_ctx"], params["v"], params["bv"])
    in_specs = [vmem, vmem, smem] + [vmem] * (len(args) - 3)

    G2 = 6 * H
    gx_bytes = T * Bp * G2 * 4                 # f32 gx scratch
    feat_bytes = T * Bp * F * 2                # bf16 feature slab
    vmem_limit = int(min(112 << 20, max(32 << 20,
                                        gx_bytes + feat_bytes + (8 << 20))))

    emb, att = pl.pallas_call(
        kernel,
        out_shape=(jax.ShapeDtypeStruct((Bp, D), jnp.float32),
                   jax.ShapeDtypeStruct((Bp, K), jnp.float32)),
        in_specs=in_specs,
        out_specs=(vmem, vmem),
        scratch_shapes=[pltpu.VMEM((T * Bp, G2), jnp.float32)],   # fused gx slab
        compiler_params=pltpu.CompilerParams(vmem_limit_bytes=vmem_limit),
    )(*args)
    return emb[:B], att[:B]


# ---------------------------------------------------------------------------
# Deterministic parameter init (synthetic; mirrors module __init__ shapes)
# ---------------------------------------------------------------------------
def init_params(key, token_count, token_dim, num_features_total, att_dim):
    H = token_dim // 2
    F = num_features_total
    ks = jax.random.split(key, 15)

    def nrm(k, shape, scale=0.1):
        return (scale * jax.random.normal(k, shape)).astype(jnp.float32)

    return dict(
        tokens=nrm(ks[0], (token_count, token_dim), 1.0),       # torch.randn
        # GRU weights, stacked per gate (r, z, n), stored transposed (in, H).
        wih_f=nrm(ks[1], (3, F, H)), whh_f=nrm(ks[2], (3, H, H)),
        bih_f=nrm(ks[3], (3, 1, H)), bhh_f=nrm(ks[4], (3, 1, H)),
        wih_b=nrm(ks[5], (3, F, H)), whh_b=nrm(ks[6], (3, H, H)),
        bih_b=nrm(ks[7], (3, 1, H)), bhh_b=nrm(ks[8], (3, 1, H)),
        # Additive attention (history_in_dim=token_dim, context_dim=token_dim).
        w_hist=nrm(ks[9], (token_dim, att_dim)), b_hist=nrm(ks[10], (1, att_dim)),
        w_ctx=nrm(ks[11], (token_dim, att_dim)), b_ctx=nrm(ks[12], (1, att_dim)),
        v=nrm(ks[13], (1, att_dim)), bv=nrm(ks[14], (1, 1)),
    )


# ---------------------------------------------------------------------------
# Pure-JAX reference (per-gate f32 math, full-T loops) for sanity checking
# ---------------------------------------------------------------------------
def reference(params, feature_deltas, feature_values, features_len,
              tanh_pre=True, tanh_post=True):
    feats = jnp.concatenate([feature_deltas, feature_values], axis=-1)
    B, T, _ = feats.shape
    H = params["whh_f"].shape[1]
    lens = features_len.reshape(B, 1)

    def cell(x, h, wih, whh, bih, bhh):
        r = jax.nn.sigmoid(x @ wih[0] + bih[0] + h @ whh[0] + bhh[0])
        z = jax.nn.sigmoid(x @ wih[1] + bih[1] + h @ whh[1] + bhh[1])
        n = jnp.tanh(x @ wih[2] + bih[2] + r * (h @ whh[2] + bhh[2]))
        return (1.0 - z) * n + z * h

    h = jnp.zeros((B, H), jnp.float32)
    for t in range(T):
        h_new = cell(feats[:, t], h, params["wih_f"], params["whh_f"],
                     params["bih_f"], params["bhh_f"])
        h = jnp.where(t < lens, h_new, h)
    h_f = h
    h = jnp.zeros((B, H), jnp.float32)
    for t in range(T - 1, -1, -1):
        h_new = cell(feats[:, t], h, params["wih_b"], params["whh_b"],
                     params["bih_b"], params["bhh_b"])
        h = jnp.where(t < lens, h_new, h)
    h_b = h

    context = jnp.concatenate([h_f, h_b], axis=-1)
    tokens = params["tokens"]
    if tanh_pre:
        tokens = jnp.tanh(tokens)
    hp = tokens @ params["w_hist"] + params["b_hist"]
    cp = context @ params["w_ctx"] + params["b_ctx"]
    scores = jnp.sum(jnp.tanh(hp[None] + cp[:, None])
                     * params["v"].reshape(1, 1, -1), axis=-1) + params["bv"][0, 0]
    w = jax.nn.softmax(scores, axis=-1)
    emb = w @ tokens
    if tanh_post:
        emb = jnp.tanh(emb)
    return emb, w


# ---------------------------------------------------------------------------
if __name__ == "__main__":
    B, T = 2, 8
    num_features = 4                # per feature stream
    token_count, token_dim, att_dim = 8, 32, 32   # att_dim == token_dim (context)

    key = jax.random.PRNGKey(0)
    k1, k2, k3 = jax.random.split(key, 3)
    feature_deltas = jax.random.normal(k1, (B, T, num_features), jnp.float32)
    feature_values = jax.random.normal(k2, (B, T, num_features), jnp.float32)
    features_len = jnp.array([T, 5], dtype=jnp.int32)

    params = init_params(k3, token_count, token_dim,
                         num_features * 2, att_dim)

    emb, att = ist_one_shot_encoder(params, feature_deltas, feature_values,
                                    features_len)
    jax.block_until_ready((emb, att))

    ref_emb, ref_att = reference(params, feature_deltas, feature_values,
                                 features_len)
    # Tolerance covers the bf16 MXU inputs on the GRU path (weights/inputs in
    # bf16 with f32 accumulation; worst-case drift over the recurrence is
    # ~1e-2). The f32 reference is exact; the attention stage itself is f32.
    np.testing.assert_allclose(np.asarray(emb), np.asarray(ref_emb),
                               rtol=2e-2, atol=2e-2)
    np.testing.assert_allclose(np.asarray(att), np.asarray(ref_att),
                               rtol=2e-2, atol=2e-2)
    assert emb.shape == (B, token_dim) and att.shape == (B, token_count)

    print("KERNEL_OK")
</pallas_src>

<mosaic_0001>
module attributes {stable_mosaic.version = 11 : i64} {
  func.func @kernel(%arg0: memref<64x8xbf16, #tpu.memory_space<vmem>>, %arg1: memref<8x1xi32, #tpu.memory_space<vmem>>, %arg2: memref<1xi32, #tpu.memory_space<smem>>, %arg3: memref<8x96xbf16, #tpu.memory_space<vmem>>, %arg4: memref<1x96xf32, #tpu.memory_space<vmem>>, %arg5: memref<32x96xbf16, #tpu.memory_space<vmem>>, %arg6: memref<1x16xf32, #tpu.memory_space<vmem>>, %arg7: memref<1x16xf32, #tpu.memory_space<vmem>>, %arg8: memref<8x32xf32, #tpu.memory_space<vmem>>, %arg9: memref<32x32xf32, #tpu.memory_space<vmem>>, %arg10: memref<1x32xf32, #tpu.memory_space<vmem>>, %arg11: memref<32x32xf32, #tpu.memory_space<vmem>>, %arg12: memref<1x32xf32, #tpu.memory_space<vmem>>, %arg13: memref<1x32xf32, #tpu.memory_space<vmem>>, %arg14: memref<1x1xf32, #tpu.memory_space<vmem>>, %arg15: memref<8x32xf32, #tpu.memory_space<vmem>>, %arg16: memref<8x8xf32, #tpu.memory_space<vmem>>, %arg17: memref<64x96xf32, #tpu.memory_space<vmem>>) attributes {dimension_semantics = [], scalar_prefetch = 0 : i64, scratch_operands = 1 : i64, tpu.core_type = #tpu.core_type<tc>} {
    %c0 = arith.constant 0 : index
    %c0_0 = arith.constant 0 : index
    %0 = vector.load %arg0[%c0, %c0_0] : memref<64x8xbf16, #tpu.memory_space<vmem>>, vector<64x8xbf16>
    %c0_1 = arith.constant 0 : index
    %c0_2 = arith.constant 0 : index
    %1 = vector.load %arg3[%c0_1, %c0_2] : memref<8x96xbf16, #tpu.memory_space<vmem>>, vector<8x96xbf16>
    %cst = arith.constant dense<0.000000e+00> : vector<64x96xf32>
    %2 = tpu.matmul %0, %1, %cst {dimension_numbers = #tpu.dot_dimension_numbers<[1], [0], [0], [1], [0, 0, 1, 1], [], []>} : vector<64x8xbf16>, vector<8x96xbf16>, vector<64x96xf32> -> vector<64x96xf32>
    %c0_3 = arith.constant 0 : index
    %c0_4 = arith.constant 0 : index
    %3 = vector.load %arg4[%c0_3, %c0_4] : memref<1x96xf32, #tpu.memory_space<vmem>>, vector<1x96xf32>
    %4 = vector.broadcast %3 : vector<1x96xf32> to vector<64x96xf32>
    %5 = arith.addf %2, %4 : vector<64x96xf32>
    %c0_5 = arith.constant 0 : index
    %c0_6 = arith.constant 0 : index
    %6 = vector.load %arg17[%c0_5, %c0_6] : memref<64x96xf32, #tpu.memory_space<vmem>>, vector<64x96xf32>
    tpu.vector_store %arg17[%c0_5, %c0_6], %5 {strides = array<i32>} : memref<64x96xf32, #tpu.memory_space<vmem>>, vector<64x96xf32>,
    %c0_7 = arith.constant 0 : index
    %c0_8 = arith.constant 0 : index
    %7 = vector.load %arg1[%c0_7, %c0_8] : memref<8x1xi32, #tpu.memory_space<vmem>>, vector<8x1xi32>
    %c0_9 = arith.constant 0 : index
    %8 = memref.load %arg2[%c0_9] : memref<1xi32, #tpu.memory_space<smem>>
    %c0_10 = arith.constant 0 : index
    %c0_11 = arith.constant 0 : index
    %9 = vector.load %arg5[%c0_10, %c0_11] : memref<32x96xbf16, #tpu.memory_space<vmem>>, vector<32x96xbf16>
    %c0_12 = arith.constant 0 : index
    %c0_13 = arith.constant 0 : index
    %10 = vector.load %arg6[%c0_12, %c0_13] : memref<1x16xf32, #tpu.memory_space<vmem>>, vector<1x16xf32>
    %11 = vector.shape_cast %10 : vector<1x16xf32> to vector<1x16xf32>
    %12 = vector.broadcast %11 : vector<1x16xf32> to vector<8x16xf32>
    %c0_14 = arith.constant 0 : index
    %c0_15 = arith.constant 0 : index
    %13 = vector.load %arg7[%c0_14, %c0_15] : memref<1x16xf32, #tpu.memory_space<vmem>>, vector<1x16xf32>
    %14 = vector.shape_cast %13 : vector<1x16xf32> to vector<1x16xf32>
    %15 = vector.broadcast %14 : vector<1x16xf32> to vector<8x16xf32>
    %cst_16 = arith.constant 0.000000e+00 : f32
    %16 = vector.broadcast %cst_16 : f32 to vector<8x32xf32>
    %c0_i32 = arith.constant 0 : i32
    %17 = arith.subi %8, %c0_i32 : i32
    %18 = arith.addi %c0_i32, %17 : i32
    %c1_i32 = arith.constant 1 : i32
    %19 = scf.for %arg18 = %c0_i32 to %18 step %c1_i32 iter_args(%arg19 = %16) -> (vector<8x32xf32>)  : i32 {
      %59 = arith.truncf %arg19 : vector<8x32xf32> to vector<8x32xbf16>
      %cst_41 = arith.constant dense<0.000000e+00> : vector<8x96xf32>
      %60 = tpu.matmul %59, %9, %cst_41 {dimension_numbers = #tpu.dot_dimension_numbers<[1], [0], [0], [1], [0, 0, 1, 1], [], []>} : vector<8x32xbf16>, vector<32x96xbf16>, vector<8x96xf32> -> vector<8x96xf32>
      %c1_i32_42 = arith.constant 1 : i32
      %61 = arith.subi %8, %c1_i32_42 : i32
      %62 = arith.subi %61, %arg18 : i32
      %c8_i32 = arith.constant 8 : i32
      %63 = arith.muli %arg18, %c8_i32 : i32
      %64 = tpu.assume_multiple %63, 8 : i32
      %c8_i32_43 = arith.constant 8 : i32
      %65 = arith.muli %62, %c8_i32_43 : i32
      %66 = tpu.assume_multiple %65, 8 : i32
      %67 = arith.index_cast %64 : i32 to index
      %c0_44 = arith.constant 0 : index
      %68 = vector.load %arg17[%67, %c0_44] : memref<64x96xf32, #tpu.memory_space<vmem>>, vector<8x96xf32>
      %69 = arith.index_cast %66 : i32 to index
      %c0_45 = arith.constant 0 : index
      %70 = vector.load %arg17[%69, %c0_45] : memref<64x96xf32, #tpu.memory_space<vmem>>, vector<8x96xf32>
      %71 = vector.extract_strided_slice %arg19 {offsets = [0, 0], sizes = [8, 16], strides = [1, 1]} : vector<8x32xf32> to vector<8x16xf32>
      %72 = vector.extract_strided_slice %arg19 {offsets = [0, 16], sizes = [8, 16], strides = [1, 1]} : vector<8x32xf32> to vector<8x16xf32>
      %73 = vector.extract_strided_slice %68 {offsets = [0, 0], sizes = [8, 16], strides = [1, 1]} : vector<8x96xf32> to vector<8x16xf32>
      %74 = vector.extract_strided_slice %60 {offsets = [0, 0], sizes = [8, 16], strides = [1, 1]} : vector<8x96xf32> to vector<8x16xf32>
      %75 = arith.addf %73, %74 : vector<8x16xf32>
      %76 = arith.negf %75 : vector<8x16xf32>
      %77 = math.exp %76 : vector<8x16xf32>
      %cst_46 = arith.constant 1.000000e+00 : f32
      %78 = vector.broadcast %cst_46 : f32 to vector<8x16xf32>
      %79 = arith.addf %78, %77 : vector<8x16xf32>
      %80 = arith.divf %78, %79 : vector<8x16xf32>
      %81 = vector.extract_strided_slice %68 {offsets = [0, 16], sizes = [8, 16], strides = [1, 1]} : vector<8x96xf32> to vector<8x16xf32>
      %82 = vector.extract_strided_slice %60 {offsets = [0, 16], sizes = [8, 16], strides = [1, 1]} : vector<8x96xf32> to vector<8x16xf32>
      %83 = arith.addf %81, %82 : vector<8x16xf32>
      %84 = arith.negf %83 : vector<8x16xf32>
      %85 = math.exp %84 : vector<8x16xf32>
      %cst_47 = arith.constant 1.000000e+00 : f32
      %86 = vector.broadcast %cst_47 : f32 to vector<8x16xf32>
      %87 = arith.addf %86, %85 : vector<8x16xf32>
      %88 = arith.divf %86, %87 : vector<8x16xf32>
      %89 = vector.extract_strided_slice %68 {offsets = [0, 32], sizes = [8, 16], strides = [1, 1]} : vector<8x96xf32> to vector<8x16xf32>
      %90 = vector.extract_strided_slice %60 {offsets = [0, 32], sizes = [8, 16], strides = [1, 1]} : vector<8x96xf32> to vector<8x16xf32>
      %91 = arith.addf %90, %12 : vector<8x16xf32>
      %92 = arith.mulf %80, %91 : vector<8x16xf32>
      %93 = arith.addf %89, %92 : vector<8x16xf32>
      %94 = math.tanh %93 : vector<8x16xf32>
      %cst_48 = arith.constant 1.000000e+00 : f32
      %95 = vector.broadcast %cst_48 : f32 to vector<8x16xf32>
      %96 = arith.subf %95, %88 : vector<8x16xf32>
      %97 = arith.mulf %96, %94 : vector<8x16xf32>
      %98 = arith.mulf %88, %71 : vector<8x16xf32>
      %99 = arith.addf %97, %98 : vector<8x16xf32>
      %100 = vector.extract_strided_slice %70 {offsets = [0, 48], sizes = [8, 16], strides = [1, 1]} : vector<8x96xf32> to vector<8x16xf32>
      %101 = vector.extract_strided_slice %60 {offsets = [0, 48], sizes = [8, 16], strides = [1, 1]} : vector<8x96xf32> to vector<8x16xf32>
      %102 = arith.addf %100, %101 : vector<8x16xf32>
      %103 = arith.negf %102 : vector<8x16xf32>
      %104 = math.exp %103 : vector<8x16xf32>
      %cst_49 = arith.constant 1.000000e+00 : f32
      %105 = vector.broadcast %cst_49 : f32 to vector<8x16xf32>
      %106 = arith.addf %105, %104 : vector<8x16xf32>
      %107 = arith.divf %105, %106 : vector<8x16xf32>
      %108 = vector.extract_strided_slice %70 {offsets = [0, 64], sizes = [8, 16], strides = [1, 1]} : vector<8x96xf32> to vector<8x16xf32>
      %109 = vector.extract_strided_slice %60 {offsets = [0, 64], sizes = [8, 16], strides = [1, 1]} : vector<8x96xf32> to vector<8x16xf32>
      %110 = arith.addf %108, %109 : vector<8x16xf32>
      %111 = arith.negf %110 : vector<8x16xf32>
      %112 = math.exp %111 : vector<8x16xf32>
      %cst_50 = arith.constant 1.000000e+00 : f32
      %113 = vector.broadcast %cst_50 : f32 to vector<8x16xf32>
      %114 = arith.addf %113, %112 : vector<8x16xf32>
      %115 = arith.divf %113, %114 : vector<8x16xf32>
      %116 = vector.extract_strided_slice %70 {offsets = [0, 80], sizes = [8, 16], strides = [1, 1]} : vector<8x96xf32> to vector<8x16xf32>
      %117 = vector.extract_strided_slice %60 {offsets = [0, 80], sizes = [8, 16], strides = [1, 1]} : vector<8x96xf32> to vector<8x16xf32>
      %118 = arith.addf %117, %15 : vector<8x16xf32>
      %119 = arith.mulf %107, %118 : vector<8x16xf32>
      %120 = arith.addf %116, %119 : vector<8x16xf32>
      %121 = math.tanh %120 : vector<8x16xf32>
      %cst_51 = arith.constant 1.000000e+00 : f32
      %122 = vector.broadcast %cst_51 : f32 to vector<8x16xf32>
      %123 = arith.subf %122, %115 : vector<8x16xf32>
      %124 = arith.mulf %123, %121 : vector<8x16xf32>
      %125 = arith.mulf %115, %72 : vector<8x16xf32>
      %126 = arith.addf %124, %125 : vector<8x16xf32>
      %127 = vector.broadcast %arg18 : i32 to vector<8x1xi32>
      %128 = arith.cmpi slt, %127, %7 : vector<8x1xi32>
      %129 = vector.shape_cast %128 : vector<8x1xi1> to vector<8x1xi1>
      %130 = vector.broadcast %129 : vector<8x1xi1> to vector<8x16xi1>
      %131 = arith.select %130, %99, %71 : vector<8x16xi1>, vector<8x16xf32>
      %132 = vector.broadcast %62 : i32 to vector<8x1xi32>
      %133 = arith.cmpi slt, %132, %7 : vector<8x1xi32>
      %134 = vector.shape_cast %133 : vector<8x1xi1> to vector<8x1xi1>
      %135 = vector.broadcast %134 : vector<8x1xi1> to vector<8x16xi1>
      %136 = arith.select %135, %126, %72 : vector<8x16xi1>, vector<8x16xf32>
      %137 = tpu.concatenate %131, %136 in 1 : vector<8x16xf32>, vector<8x16xf32> -> vector<8x32xf32>
      scf.yield %137 : vector<8x32xf32>
    }
    %c0_17 = arith.constant 0 : index
    %c0_18 = arith.constant 0 : index
    %20 = vector.load %arg8[%c0_17, %c0_18] : memref<8x32xf32, #tpu.memory_space<vmem>>, vector<8x32xf32>
    %21 = math.tanh %20 : vector<8x32xf32>
    %c0_19 = arith.constant 0 : index
    %c0_20 = arith.constant 0 : index
    %22 = vector.load %arg9[%c0_19, %c0_20] : memref<32x32xf32, #tpu.memory_space<vmem>>, vector<32x32xf32>
    %cst_21 = arith.constant dense<0.000000e+00> : vector<8x32xf32>
    %23 = tpu.matmul %21, %22, %cst_21 {dimension_numbers = #tpu.dot_dimension_numbers<[1], [0], [0], [1], [0, 0, 1, 1], [], []>} : vector<8x32xf32>, vector<32x32xf32>, vector<8x32xf32> -> vector<8x32xf32>
    %c0_22 = arith.constant 0 : index
    %c0_23 = arith.constant 0 : index
    %24 = vector.load %arg10[%c0_22, %c0_23] : memref<1x32xf32, #tpu.memory_space<vmem>>, vector<1x32xf32>
    %25 = vector.broadcast %24 : vector<1x32xf32> to vector<8x32xf32>
    %26 = arith.addf %23, %25 : vector<8x32xf32>
    %c0_24 = arith.constant 0 : index
    %c0_25 = arith.constant 0 : index
    %27 = vector.load %arg11[%c0_24, %c0_25] : memref<32x32xf32, #tpu.memory_space<vmem>>, vector<32x32xf32>
    %cst_26 = arith.constant dense<0.000000e+00> : vector<8x32xf32>
    %28 = tpu.matmul %19, %27, %cst_26 {dimension_numbers = #tpu.dot_dimension_numbers<[1], [0], [0], [1], [0, 0, 1, 1], [], []>} : vector<8x32xf32>, vector<32x32xf32>, vector<8x32xf32> -> vector<8x32xf32>
    %c0_27 = arith.constant 0 : index
    %c0_28 = arith.constant 0 : index
    %29 = vector.load %arg12[%c0_27, %c0_28] : memref<1x32xf32, #tpu.memory_space<vmem>>, vector<1x32xf32>
    %30 = vector.broadcast %29 : vector<1x32xf32> to vector<8x32xf32>
    %31 = arith.addf %28, %30 : vector<8x32xf32>
    %32 = vector.shape_cast %26 : vector<8x32xf32> to vector<1x8x32xf32>
    %33 = vector.shape_cast %31 : vector<8x32xf32> to vector<8x1x32xf32>
    %34 = vector.broadcast %32 : vector<1x8x32xf32> to vector<8x8x32xf32>
    %35 = vector.broadcast %33 : vector<8x1x32xf32> to vector<8x8x32xf32>
    %36 = arith.addf %34, %35 : vector<8x8x32xf32>
    %37 = math.tanh %36 : vector<8x8x32xf32>
    %c0_29 = arith.constant 0 : index
    %c0_30 = arith.constant 0 : index
    %38 = vector.load %arg13[%c0_29, %c0_30] : memref<1x32xf32, #tpu.memory_space<vmem>>, vector<1x32xf32>
    %39 = vector.shape_cast %38 : vector<1x32xf32> to vector<1x1x32xf32>
    %40 = vector.broadcast %39 : vector<1x1x32xf32> to vector<8x8x32xf32>
    %41 = arith.mulf %37, %40 : vector<8x8x32xf32>
    %cst_31 = arith.constant dense<0.000000e+00> : vector<8x8xf32>
    %42 = vector.multi_reduction <add>, %41, %cst_31 [2] : vector<8x8x32xf32> to vector<8x8xf32>
    %c0_32 = arith.constant 0 : index
    %c0_33 = arith.constant 0 : index
    %43 = vector.load %arg14[%c0_32, %c0_33] : memref<1x1xf32, #tpu.memory_space<vmem>>, vector<1x1xf32>
    %44 = vector.broadcast %43 : vector<1x1xf32> to vector<8x8xf32>
    %45 = arith.addf %42, %44 : vector<8x8xf32>
    %cst_34 = arith.constant dense<0xFF800000> : vector<8xf32>
    %46 = vector.multi_reduction <maximumf>, %45, %cst_34 [1] : vector<8x8xf32> to vector<8xf32>
    %47 = vector.shape_cast %46 : vector<8xf32> to vector<8x1xf32>
    %48 = vector.broadcast %47 : vector<8x1xf32> to vector<8x8xf32>
    %49 = arith.subf %45, %48 : vector<8x8xf32>
    %50 = math.exp %49 : vector<8x8xf32>
    %cst_35 = arith.constant dense<0.000000e+00> : vector<8xf32>
    %51 = vector.multi_reduction <add>, %50, %cst_35 [1] : vector<8x8xf32> to vector<8xf32>
    %52 = vector.shape_cast %51 : vector<8xf32> to vector<8x1xf32>
    %53 = vector.broadcast %52 : vector<8x1xf32> to vector<8x8xf32>
    %54 = arith.divf %50, %53 : vector<8x8xf32>
    %cst_36 = arith.constant dense<0.000000e+00> : vector<8x32xf32>
    %55 = tpu.matmul %54, %21, %cst_36 {dimension_numbers = #tpu.dot_dimension_numbers<[1], [0], [0], [1], [0, 0, 1, 1], [], []>} : vector<8x8xf32>, vector<8x32xf32>, vector<8x32xf32> -> vector<8x32xf32>
    %56 = math.tanh %55 : vector<8x32xf32>
    %c0_37 = arith.constant 0 : index
    %c0_38 = arith.constant 0 : index
    %57 = vector.load %arg15[%c0_37, %c0_38] : memref<8x32xf32, #tpu.memory_space<vmem>>, vector<8x32xf32>
    tpu.vector_store %arg15[%c0_37, %c0_38], %56 {strides = array<i32>} : memref<8x32xf32, #tpu.memory_space<vmem>>, vector<8x32xf32>,
    %c0_39 = arith.constant 0 : index
    %c0_40 = arith.constant 0 : index
    %58 = vector.load %arg16[%c0_39, %c0_40] : memref<8x8xf32, #tpu.memory_space<vmem>>, vector<8x8xf32>
    tpu.vector_store %arg16[%c0_39, %c0_40], %54 {strides = array<i32>} : memref<8x8xf32, #tpu.memory_space<vmem>>, vector<8x8xf32>,
    return
  }
}

</mosaic_0001>

<bundles_post_ra>
// kernel: ist_one_shot_encoder.1
= control target key start
LH: loop header
LB: loop body
LE: loop exit
PB: predicated region body
PF: predicated region fallthrough
CT: control target
= control target key end

     0   :  { %vm105_vm0 = vcmask 1043456   ;;  %vm92_vm1 = vcmask 64512   ;;  %vm174_vm2 = vcmask 785408   ;;  %v1522_v31 = vmov 0.0   ;;  %s1745_s2 = inlined_call_operand.<no memory space> [shape: s32[1], index: 2, kind: input, shape index: {}]   ;;  %s1746_s3 = inlined_call_operand.vmem [shape: bf16[8,96], index: 3, kind: input, shape index: {}]   ;;  %s1747_s8 = inlined_call_operand.vmem [shape: f32[8,32], index: 8, kind: input, shape index: {}]   ;;  %s1748_s9 = inlined_call_operand.vmem [shape: f32[32,32], index: 9, kind: input, shape index: {}]   ;;  %s1749_s10 = inlined_call_operand.vmem [shape: f32[1,32], index: 10, kind: input, shape index: {}]   ;;  %s1750_s11 = inlined_call_operand.vmem [shape: f32[32,32], index: 11, kind: input, shape index: {}]   ;;  %s1751_s12 = inlined_call_operand.vmem [shape: f32[1,32], index: 12, kind: input, shape index: {}]   ;;  %s1752_s13 = inlined_call_operand.vmem [shape: f32[1,32], index: 13, kind: input, shape index: {}]   ;;  %s1753_s14 = inlined_call_operand.<no memory space> [shape: f32[1,1], index: 14, kind: input, shape index: {}]   ;;  %s1754_s15 = inlined_call_operand.vmem [shape: f32[8,32], index: 15, kind: output, shape index: {0}]   ;;  %s1755_s16 = inlined_call_operand.vmem [shape: f32[8,8], index: 16, kind: output, shape index: {1}]   ;;  %s1756_s0 = inlined_call_operand.vmem [shape: bf16[64,8], index: 0, kind: input, shape index: {}]   ;;  %s1757_s1 = inlined_call_operand.vmem [shape: s32[8,1], index: 1, kind: input, shape index: {}]   ;;  %s1758_s5 = inlined_call_operand.vmem [shape: bf16[32,96], index: 5, kind: input, shape index: {}]   ;;  %s1759_s6 = inlined_call_operand.vmem [shape: f32[1,16], index: 6, kind: input, shape index: {}]   ;;  %s1760_s7 = inlined_call_operand.vmem [shape: f32[1,16], index: 7, kind: input, shape index: {}]   ;;  %s1761_s4 = inlined_call_operand.vmem [shape: f32[1,96], index: 4, kind: input, shape index: {}]  }
   0x1   :  { %1763 = sst [smem:[#allocation5_spill]] %s1745_s2  ;;  %v23_v0 = vstv %s1753_s14  ;;  %v64_v1 = vld [vmem:[%s1746_s3] sm:$0xf]  ;;  %v1258_v4 = vld [vmem:[%s1756_s0 + $0x10] sm:$0xff]   ;;  %v1259_v5 = vld [vmem:[%s1756_s0 + $0x8] sm:$0xff]  }
   0x2   :  { %24 = vst [vmem:[#allocation4] sm:$0x1] %v23_v0  ;;  %1218 = vmatprep.subr.msk.bf16.mxu0 %vm105_vm0, %v64_v1  ;;  %1219 = vmatprep.subr.msk.bf16.mxu1 %vm105_vm0, %v64_v1  ;;  %v107_v2 = vsel %vm105_vm0, %v64_v1, 0  ;;  %v1257_v3 = vld [vmem:[%s1756_s0] sm:$0xff]   ;;  %v1260_v6 = vld [vmem:[%s1756_s0 + $0x18] sm:$0xff]  }
   0x3   :  { %1172 = vmatpush3.bf16.msra.mxu0 %v107_v2  ;;  %1217 = vmatpush3.bf16.msra.mxu1 %v107_v2  ;;  %v1476_v7 = vld [vmem:[%s1757_s1] sm:$0xff]  ;;  %v1491_v10 = vld [vmem:[%s1758_s5 + $0x8] sm:$0xf]  ;;  %v1496_v11 = vld [vmem:[%s1758_s5 + $0xc] sm:$0xf] }
   0x4   :  { %1173 = vmatprep.mubr.msk.bf16.mxu0 %vm92_vm1, %v1257_v3  ;;  %1177 = vmatprep.mubr.msk.bf16.mxu1 %vm92_vm1, %v1258_v4  ;;  %v1481_v8 = vld [vmem:[%s1758_s5] sm:$0xf]  ;;  %v1486_v9 = vld [vmem:[%s1758_s5 + $0x4] sm:$0xf] }
   0x5   :  { %v1501_v12 = vld [vmem:[%s1759_s6] ss:$0 sm:$0xff]  ;;  %s1764_s6 = sld [smem:[#allocation5_spill]] }
   0x6   :  { %1174 = vmatmul.mubr.msk.bf16.vlgmr.msra.gmra.mxu0 %vm92_vm1, %v1259_v5  ;;  %1178 = vmatmul.mubr.msk.bf16.vlgmr.msra.gmra.mxu1 %vm92_vm1, %v1260_v6  ;;  %v1506_v13 = vld [vmem:[%s1760_s7] ss:$0 sm:$0xff] }
   0x7   :  { %v1124_v14 = vld [vmem:[%s1761_s4] ss:$0 sm:$0xff] }
   0xb   :  { %p1135_p0 = scmp.le.s32.totalorder %s1764_s6, 0 }
   0xc   :  { %s1526_s7 = smov (!%p1135_p0), 0  }
  0xc6   :  { %v1175_v15 = vpop.f32.mrf.mxu0  ;;  %v1179_v17 = vpop.f32.mrf.mxu1 }
  0xc7   :  { %v152_v16 = vadd.f32 %v1175_v15, %v1124_v14  ;;  %v168_v18 = vadd.f32 %v1179_v17, %v1124_v14 }
  0xc8   :  { %v143_v19 = vpop.f32.mrf.mxu0  ;;  %v159_v21 = vpop.f32.mrf.mxu1 }
  0xc9   :  { %177 = vst.msk [vmem:[#allocation2 + $0x10] sm:$0xff] %vm174_vm2, %v152_v16  ;;  %v144_v20 = vadd.f32 %v1124_v14, %v143_v19  ;;  %181 = vst.msk [vmem:[#allocation2 + $0x30] sm:$0xff] %vm174_vm2, %v168_v18  ;;  %v160_v22 = vadd.f32 %v1124_v14, %v159_v21 }
  0xca   :  { %v1176_v23 = vpop.f32.mrf.mxu0  ;;  %v1180_v25 = vpop.f32.mrf.mxu1 }
  0xcb   :  { %175 = vst.msk [vmem:[#allocation2] sm:$0xff] %vm174_vm2, %v144_v20  ;;  %v155_v24 = vadd.f32 %v1176_v23, %v1124_v14  ;;  %179 = vst.msk [vmem:[#allocation2 + $0x20] sm:$0xff] %vm174_vm2, %v160_v22  ;;  %v171_v26 = vadd.f32 %v1180_v25, %v1124_v14  ;;  %1119 = sbr.rel (%p1135_p0) target bundleno = 902 (0x386), region = 91 }
  0xcc   :  { %v146_v27 = vpop.f32.mrf.mxu0  ;;  %v162_v29 = vpop.f32.mrf.mxu1 }
  0xcd   :  { %178 = vst.msk [vmem:[#allocation2 + $0x18] sm:$0xff] %vm174_vm2, %v155_v24  ;;  %v147_v28 = vadd.f32 %v1124_v14, %v146_v27  ;;  %182 = vst.msk [vmem:[#allocation2 + $0x38] sm:$0xff] %vm174_vm2, %v171_v26  ;;  %v163_v30 = vadd.f32 %v1124_v14, %v162_v29 }
  0xcf   :  { %176 = vst.msk [vmem:[#allocation2 + $0x8] sm:$0xff] %vm174_vm2, %v147_v28  ;;  %180 = vst.msk [vmem:[#allocation2 + $0x28] sm:$0xff] %vm174_vm2, %v163_v30 }
  0xd0   :  { %v1524_v32 = vmov 0.0  }
  0xd1 LB: > { %v1137_v33 = vcombine.low %v1491_v10, %v1496_v11  ;;  %v1353_v34 = vmov 0.0   ;;  %vm1354_vm3 = vmmov 0   ;;  %v1136_v35 = vcombine.low %v1481_v8, %v1486_v9  ;;  %s1355_s29 = smov 32   ;;  %s1356_s3 = smov 80   ;;  %s1347_s7 = sphi %s1526_s7, %s204_s7   ;;  %v1343_v32 = vphi %v1524_v32, %v1766_v32  }
  0xd2   : > { %1181 = vmatprep.subr.bf16.mxu0 %v1353_v34  ;;  %1185 = vmatprep.mubr.msk.bf16.mxu0 %vm1354_vm3, %v1353_v34  ;;  %v208_v36 = vpack.c.bf16 %v1343_v32, %v1343_v32  ;;  %vm221_vm4 = vcmask 261120   ;;  %v1357_v37 = vmov 0   ;;  %s1358_s30 = smov 96   ;;  %s1765_s18 = sld [smem:[#allocation5_spill]]  ;;  %v340_v56 = vstv %s1347_s7 }
  0xd3   : > { %1182 = vmatpush3.bf16.msra.mxu0 %v1137_v33  ;;  %280 = vrot.lane.b32.xlu0 %v1501_v12, %s1355_s29  ;;  %s1140_s20 = sshll.u32 %s1347_s7, 3  ;;  %vm341_vm5 = vcmp.lt.s32.totalorder %v340_v56, %v1476_v7  ;;  %s1359_s24 = smov 16   ;;  %vm364_vm9 = vcmask 130048  }
  0xd4   : > { %1183 = vmatprep.subr.bf16.mxu0 %v1353_v34  ;;  %1261 = vset.pattern.permute.xlu0 %v1357_v37  ;;  %s269_s22 = scalar_lea.vmem [#allocation2], %s1140_s20  ;;  %v342_v63 = vsel %vm341_vm5, 1, %v1357_v37  ;;  %s1360_s1 = smov 48  }
  0xd5   : > { %1262 = vset.pattern.permute.xlu1 %v1357_v37  ;;  %s1361_s25 = smov 112  }
  0xd6   : > { %v270_v46 = vld [vmem:[%s269_s22] sm:$0xff] }
  0xd7   : > { %1184 = vmatpush3.bf16.msra.mxu0 %v1136_v35  ;;  %314 = vrot.lane.b32.xlu0 %v1506_v13, %s1356_s3 }
  0xd8   : > { %s1139_s19 = sadd.s32 4294967295, %s1765_s18 }
  0xd9   : > { %s266_s21 = ssub.s32 %s1139_s19, %s1347_s7  ;;  %s204_s7 = sadd.s32 1, %s1347_s7  }
  0xda   : > { %1186 = vmatmul.mubr.msk.bf16.vlgmr.msra.gmra.mxu0 %vm221_vm4, %v208_v36  ;;  %s1141_s0 = sshll.u32 %s266_s21, 3  ;;  %v348_v60 = vstv %s266_s21  ;;  %p203_p1 = scmp.ge.s32.totalorder %s204_s7, %s1765_s18 }
  0xdb   : > { %s271_s23 = scalar_lea.vmem [#allocation2], %s1141_s0  ;;  %vm349_vm6 = vcmp.lt.s32.totalorder %v348_v60, %v1476_v7 }
  0xdc   : > { %v272_v48 = vld [vmem:[%s271_s23] sm:$0xff]  ;;  %v350_v1 = vsel %vm349_vm6, 1, %v1357_v37 }
 0x145   : > { %v281_v38 = vpop.permute.xlu0 %280 }
 0x149   : > { %v315_v41 = vpop.permute.xlu0 %314 }
 0x19a   : > { %v259_v39 = vpop.f32.mrf.mxu0 }
 0x19b   : > { %v283_v40 = vadd.f32 %v281_v38, %v259_v39  ;;  %v317_v44 = vadd.f32 %v315_v41, %v259_v39  ;;  %v273_v47 = vadd.f32 %v270_v46, %v259_v39  ;;  %v307_v50 = vadd.f32 %v272_v48, %v259_v39 }
 0x19c   : > { %v1187_v42 = vpop.f32.mrf.mxu0 }
 0x19d   : > { %285 = vrot.lane.b32.xlu1 %v283_v40, %s1358_s30  ;;  %v1142_v49 = vmul.f32 -1.442695, %v273_v47  ;;  %v1143_v51 = vmul.f32 -1.442695, %v307_v50 }
 0x19e   : > { %v262_v43 = vpop.f32.mrf.mxu0 }
 0x19f   : > { %1263 = vpow2.f32 %v1142_v49 }
 0x1a0   : > { %v1188_v45 = vpop.f32.mrf.mxu0  ;;  %1265 = vpow2.f32 %v1143_v51 }
 0x1a1   : > { %319 = vrot.lane.b32.xlu1 %v317_v44, %s1358_s30 }
 0x1ac   : > { %v1264_v52 = vpop.eup %1263 }
 0x1ad   : > { %v277_v53 = vadd.f32 1.0, %v1264_v52  ;;  %v1266_v54 = vpop.eup %1265 }
 0x1ae   : > { %v311_v55 = vadd.f32 1.0, %v1266_v54 }
 0x1af   : > { %1267 = vrcp.f32 %v277_v53 }
 0x1b0   : > { %1269 = vrcp.f32 %v311_v55 }
 0x1bc   : > { %v1268_v57 = vpop.eup %1267 }
 0x1bd   : > { %v1270_v61 = vpop.eup %1269  ;;  %v295_v18 = vsub.f32 1.0, %v1268_v57 }
 0x1be   : > { %v329_v24 = vsub.f32 1.0, %v1270_v61 }
 0x20f   : > { %v286_v58 = vpop.permute.xlu1 %285 }
 0x210   : > { %v288_v59 = vmul.f32 %v1268_v57, %v286_v58 }
 0x212   : > { %290 = vrot.lane.b32.xlu0 %v288_v59, %s1355_s29 }
 0x213   : > { %v320_v62 = vpop.permute.xlu1 %319 }
 0x214   : > { %v322_v0 = vmul.f32 %v1270_v61, %v320_v62 }
 0x216   : > { %324 = vrot.lane.b32.xlu1 %v322_v0, %s1355_s29  ;;  %344 = vperm.xlu0 %1261, %v342_v63  }
 0x21a   : > { %302 = vrot.lane.b32.xlu0 %v1343_v32, %s1359_s24  ;;  %352 = vperm.xlu1 %1262, %v350_v1  }
 0x21e   : > { %335 = vrot.lane.b32.xlu0 %v1343_v32, %s1360_s1 }
 0x284   : > { %v291_v2 = vpop.permute.xlu0 %290 }
 0x285   : > { %v293_v3 = vadd.f32 %v291_v2, %v270_v46 }
 0x287   : > { %1271 = vtanh.f32 %v293_v3 }
 0x288   : > { %v325_v4 = vpop.permute.xlu1 %324 }
 0x289   : > { %v327_v5 = vadd.f32 %v325_v4, %v272_v48 }
 0x28b   : > { %1273 = vtanh.f32 %v327_v5 }
 0x291   : > { %v345_v15 = vpop.permute.xlu0 %344 }
 0x292   : > { %vm346_vm7 = vcmp.eq.s32.totalorder %v345_v15, 1 }
 0x294   : > { %v1272_v6 = vpop.eup %1271 }
 0x295   : > { %297 = vrot.lane.b32.xlu1 %v1272_v6, %s1361_s25  ;;  %v353_v16 = vpop.permute.xlu1 %352  ;;  %v303_v17 = vpop.permute.xlu0 %302 }
 0x296   : > { %v305_v20 = vmul.f32 %v1268_v57, %v303_v17  ;;  %vm354_vm8 = vcmp.eq.s32.totalorder %v353_v16, 1 }
 0x298   : > { %v1274_v14 = vpop.eup %1273 }
 0x299   : > { %331 = vrot.lane.b32.xlu1 %v1274_v14, %s1361_s25  ;;  %v336_v22 = vpop.permute.xlu0 %335 }
 0x29a   : > { %v338_v26 = vmul.f32 %v1270_v61, %v336_v22 }
 0x307   : > { %v298_v19 = vpop.permute.xlu1 %297 }
 0x308   : > { %v300_v21 = vmul.f32 %v298_v19, %v295_v18 }
 0x30a   : > { %v306_v23 = vadd.f32 %v305_v20, %v300_v21 }
 0x30b   : > { %v332_v25 = vpop.permute.xlu1 %331 }
 0x30c   : > { %v334_v27 = vmul.f32 %v332_v25, %v329_v24  ;;  %v347_v28 = vsel %vm346_vm7, %v306_v23, %v303_v17 }
 0x30d   : > { %357 = vrot.lane.b32.xlu1 %v347_v28, %s1361_s25 }
 0x30e   : > { %v339_v29 = vadd.f32 %v338_v26, %v334_v27 }
 0x310   : > { %v355_v30 = vsel %vm354_vm8, %v339_v29, %v336_v22 }
 0x311   : > { %361 = vrot.lane.b32.xlu0 %v355_v30, %s1356_s3 }
 0x37f   : > { %v358_v31 = vpop.permute.xlu1 %357 }
 0x381   :  { %206 = sbr.rel (!%p203_p1) target bundleno = 209 (0xd1), region = 97 }
 0x383   : > { %v362_v32 = vpop.permute.xlu0 %361 }
 0x384   : > { %v365_v33 = vsel %vm364_vm9, %v358_v31, %v362_v32  }
 0x385   : > { %v1766_v32 = vmov %v365_v33  ;;  %v1767_v31 = vmov (%p203_p1), %v365_v33 }
 0x386 PF:  { %v456_v34 = vld [vmem:[%s1750_s11 + $0x18] sm:$0xff]  ;;  %v1362_v35 = vmov 0.0   ;;  %v455_v36 = vld [vmem:[%s1750_s11 + $0x10] sm:$0xff]  ;;  %v366_v9 = vld [vmem:[%s1747_s8] sm:$0xff]  ;;  %vm1363_vm10 = vmmov 0   ;;  %vm379_vm11 = vcmask 261120   ;;  %v542_v41 = vlaneseq  ;;  %v1351_v31 = vphi %v1522_v31, %v1767_v31  }
 0x387   :  { %1200 = vmatprep.subr.mxu1 %v1362_v35  ;;  %1189 = vmatprep.subr.mxu0 %v1362_v35  ;;  %v371_v7 = vld [vmem:[%s1748_s9 + $0x18] sm:$0xff]  ;;  %v370_v8 = vld [vmem:[%s1748_s9 + $0x10] sm:$0xff]  ;;  %v454_v10 = vld [vmem:[%s1750_s11 + $0x8] sm:$0xff]  ;;  %1277 = vtanh.f32 %v366_v9  ;;  %v1364_v38 = vmov 0   ;;  %v1365_v39 = vmov 1966171168  }
 0x388   :  { %1201 = vmatpush3.msra.mxu1 %v456_v34  ;;  %1190 = vmatpush3.msra.mxu0 %v371_v7  ;;  %v369_v11 = vld [vmem:[%s1748_s9 + $0x8] sm:$0xff]  ;;  %v453_v12 = vld [vmem:[%s1750_s11] sm:$0xff]  ;;  %v540_v40 = vunpack.c.l.s4 %v1365_v39  ;;  %v1601_v43 = vshrl.u32 %v542_v41, 7  ;;  %vm742_vm12 = vcmask 1041409   ;;  %vm744_vm13 = vcmask 1042434  }
 0x389   :  { %1202 = vmatprep.subr.mxu1 %v1362_v35  ;;  %1208 = vmatprep.mubr.msk.f32.mxu1 %vm1363_vm10, %v1362_v35  ;;  %v368_v13 = vld [vmem:[%s1748_s9] sm:$0xff]  ;;  %vm746_vm14 = vcmask 1043459   ;;  %vm748_vm15 = vcmask 1044484   ;;  %vm750_vm0 = vcmask 1045509   ;;  %vm752_vm2 = vcmask 1046534  }
 0x38a   :  { %1203 = vmatpush3.msra.mxu1 %v455_v36  ;;  %1191 = vmatprep.subr.mxu0 %v1362_v35  ;;  %v541_v42 = vunpack.c.0.s8 %v540_v40  ;;  %v1146_v44 = vld [vmem:[%s1751_s12] ss:$0 sm:$0xff]  ;;  %v1608_v51 = vsub.s32 0, %v1601_v43  ;;  %vm754_vm3 = vcmask 1047559  }
 0x38b   :  { %1204 = vmatprep.subr.mxu1 %v1362_v35  ;;  %1192 = vmatpush3.msra.mxu0 %v370_v8  ;;  %v1144_v59 = vld [vmem:[%s1749_s10] ss:$0 sm:$0xff] }
 0x38c   :  { %1205 = vmatpush3.msra.mxu1 %v454_v10  ;;  %1193 = vmatprep.subr.mxu0 %v1362_v35  ;;  %v544_v45 = vsub.s32 %v541_v42, %v1601_v43  ;;  %v1148_v26 = vld [vmem:[%s1752_s13] ss:$0 sm:$0xff] }
 0x38d   :  { %1206 = vmatprep.subr.mxu1 %v1362_v35  ;;  %1194 = vmatpush3.msra.mxu0 %v369_v11 }
 0x38e   :  { %1207 = vmatpush3.msra.mxu1 %v453_v12  ;;  %1195 = vmatprep.subr.mxu0 %v1362_v35 }
 0x38f   :  { %1209 = vmatmul.mubr.msk.f32.vlgmr.msra.gmra.mxu1 %vm379_vm11, %v1351_v31  ;;  %1196 = vmatpush3.msra.mxu0 %v368_v13 }
 0x390   :  { %1197 = vmatprep.mubr.msk.f32.mxu0 %vm1363_vm10, %v1362_v35  ;;  %1211 = vmatprep.subr.mxu0 %v1362_v35 }
 0x391   :  { %1275 = vset.pattern.permute.xlu0 %v1364_v38  ;;  %1276 = vset.pattern.permute.xlu1 %v1364_v38 }
 0x394   :  { %v1278_v37 = vpop.eup %1277 }
 0x395   :  { %1198 = vmatmul.mubr.msk.f32.vlgmr.msra.gmra.mxu0 %vm379_vm11, %v1278_v37 }
 0x396   :  { %1212 = vmatpush3.msra.mxu0 %v1278_v37  ;;  %1213 = vmatprep.mubr.msk.f32.mxu0 %vm1363_vm10, %v1362_v35 }
 0x44f   :  { %v533_v46 = vpop.f32.mrf.mxu1 }
 0x450   :  { %v534_v47 = vadd.f32 %v1146_v44, %v533_v46  ;;  %v1149_v46 = vld [vmem:[#allocation4] ss:$0 sm:$0xff] }
 0x451   :  { %v1210_v48 = vpop.f32.mrf.mxu1 }
 0x452   :  { %v538_v49 = vcombine.high %v534_v47, %v534_v47  ;;  %v545_v50 = vrot.slane %v534_v47, %v544_v45 }
 0x454   :  { %v552_v52 = vrot.slane %v538_v49, %v544_v45  ;;  %v553_v53 = vcombine.high %v545_v50, %v545_v50  ;;  %v561_v54 = vrot.slane %v545_v50, %v544_v45 }
 0x455   :  { %v449_v61 = vpop.f32.mrf.mxu0 }
 0x456   :  { %v554_v55 = vcombine.high %v552_v52, %v552_v52  ;;  %v568_v56 = vrot.slane %v552_v52, %v544_v45  ;;  %v575_v57 = vrot.slane %v553_v53, %v544_v45  ;;  %v583_v58 = vcombine.high %v561_v54, %v561_v54 }
 0x457   :  { %v590_v60 = vrot.slane %v561_v54, %v1608_v51  ;;  %v450_v4 = vadd.f32 %v1144_v59, %v449_v61  ;;  %v1199_v5 = vpop.f32.mrf.mxu0  ;;  %v709_v53 = vand.u32 127, %v542_v41 }
 0x458   :  { %v582_v62 = vrot.slane %v554_v55, %v544_v45  ;;  %v585_v63 = vcombine.high %v575_v57, %v575_v57  ;;  %v594_v0 = vrot.slane %v575_v57, %v1608_v51  ;;  %v584_v1 = vcombine.high %v568_v56, %v568_v56 }
 0x459   :  { %v598_v2 = vrot.slane %v583_v58, %v1608_v51  ;;  %v606_v3 = vrot.slane %v568_v56, %v1608_v51  ;;  %v627_v16 = vadd.f32 %v590_v60, %v450_v4  ;;  %v1634_v56 = vsub.s32 %v709_v53, %v1601_v43 }
 0x45a   :  { %v586_v6 = vcombine.high %v582_v62, %v582_v62  ;;  %v602_v14 = vrot.slane %v585_v63, %v1608_v51  ;;  %v610_v15 = vrot.slane %v582_v62, %v1608_v51  ;;  %v628_v18 = vadd.f32 %v594_v0, %v450_v4 }
 0x45b   :  { %v629_v17 = vadd.f32 %v598_v2, %v450_v4  ;;  %v614_v20 = vrot.slane %v584_v1, %v1608_v51  ;;  %1279 = vtanh.f32 %v627_v16  ;;  %v631_v21 = vadd.f32 %v606_v3, %v450_v4 }
 0x45c   :  { %v630_v19 = vadd.f32 %v602_v14, %v450_v4  ;;  %v618_v22 = vrot.slane %v586_v6, %v1608_v51  ;;  %v632_v23 = vadd.f32 %v610_v15, %v450_v4 }
 0x45d   :  { %1281 = vtanh.f32 %v629_v17  ;;  %v633_v24 = vadd.f32 %v614_v20, %v450_v4 }
 0x45e   :  { %1283 = vtanh.f32 %v628_v18  ;;  %v634_v25 = vadd.f32 %v618_v22, %v450_v4 }
 0x45f   :  { %1285 = vtanh.f32 %v630_v19 }
 0x460   :  { %1287 = vtanh.f32 %v631_v21 }
 0x461   :  { %1289 = vtanh.f32 %v632_v23 }
 0x462   :  { %1291 = vtanh.f32 %v633_v24 }
 0x463   :  { %1293 = vtanh.f32 %v634_v25  ;;  %v767_v25 = vsub.s32 1, %v1601_v43 }
 0x468   :  { %v1280_v27 = vpop.eup %1279 }
 0x469   :  { %v650_v29 = vmul.f32 %v1280_v27, %v1148_v26  ;;  %v771_v27 = vsub.s32 2, %v1601_v43 }
 0x46a   :  { %v1282_v28 = vpop.eup %1281 }
 0x46b   :  { %v1284_v30 = vpop.eup %1283  ;;  %v652_v31 = vmul.f32 %v1282_v28, %v1148_v26  ;;  %v658_v33 = vsel %vm379_vm11, %v650_v29, 0.0 }
 0x46c   :  { %v1286_v32 = vpop.eup %1285  ;;  %v651_v34 = vmul.f32 %v1284_v30, %v1148_v26  ;;  %659 = vadd.xlane.f32.xlu0 %v658_v33 }
 0x46d   :  { %v1288_v35 = vpop.eup %1287  ;;  %v664_v36 = vsel %vm379_vm11, %v652_v31, 0.0  ;;  %v653_v7 = vmul.f32 %v1286_v32, %v1148_v26  ;;  %v775_v32 = vsub.s32 3, %v1601_v43 }
 0x46e   :  { %v1290_v8 = vpop.eup %1289  ;;  %665 = vadd.xlane.f32.xlu1 %v664_v36  ;;  %v661_v9 = vsel %vm379_vm11, %v651_v34, 0.0  ;;  %v654_v10 = vmul.f32 %v1288_v35, %v1148_v26 }
 0x46f   :  { %v1292_v11 = vpop.eup %1291  ;;  %v667_v12 = vsel %vm379_vm11, %v653_v7, 0.0  ;;  %v655_v13 = vmul.f32 %v1290_v8, %v1148_v26  ;;  %v779_v7 = vsub.s32 4, %v1601_v43 }
 0x470   :  { %662 = vadd.xlane.f32.xlu0 %v661_v9  ;;  %v1294_v37 = vpop.eup %1293  ;;  %v670_v38 = vsel %vm379_vm11, %v654_v10, 0.0  ;;  %v656_v39 = vmul.f32 %v1292_v11, %v1148_v26 }
 0x471   :  { %v673_v40 = vsel %vm379_vm11, %v655_v13, 0.0  ;;  %v657_v42 = vmul.f32 %v1294_v37, %v1148_v26  ;;  %v791_v26 = vsub.s32 7, %v1601_v43 }
 0x472   :  { %668 = vadd.xlane.f32.xlu1 %v667_v12  ;;  %v676_v44 = vsel %vm379_vm11, %v656_v39, 0.0  ;;  %v783_v12 = vsub.s32 5, %v1601_v43 }
 0x473   :  { %v679_v45 = vsel %vm379_vm11, %v657_v42, 0.0 }
 0x474   :  { %671 = vadd.xlane.f32.xlu0 %v670_v38 }
 0x476   :  { %674 = vadd.xlane.f32.xlu1 %v673_v40  ;;  %v787_v40 = vsub.s32 6, %v1601_v43 }
 0x478   :  { %677 = vadd.xlane.f32.xlu0 %v676_v44 }
 0x47a   :  { %680 = vadd.xlane.f32.xlu1 %v679_v45 }
 0x48e   :  { %689 = vperm.xlu0 %1275, %v1149_v46  }
 0x4f5   :  { %v660_v47 = vpop.xlane.xlu0 %659 }
 0x4f7   :  { %v666_v49 = vpop.xlane.xlu1 %665 }
 0x4f9   :  { %v663_v48 = vpop.xlane.xlu0 %662 }
 0x4fb   :  { %v669_v52 = vpop.xlane.xlu1 %668 }
 0x4fd   :  { %v672_v50 = vpop.xlane.xlu0 %671 }
 0x4ff   :  { %v675_v55 = vpop.xlane.xlu1 %674 }
 0x501   :  { %v678_v54 = vpop.xlane.xlu0 %677 }
 0x503   :  { %v681_v2 = vpop.xlane.xlu1 %680 }
 0x509   :  { %v690_v57 = vpop.permute.xlu0 %689 }
 0x50a   :  { %v692_v58 = vadd.f32 %v690_v57, %v660_v47  ;;  %v693_v59 = vadd.f32 %v690_v57, %v663_v48  ;;  %v694_v60 = vadd.f32 %v690_v57, %v666_v49  ;;  %v695_v61 = vadd.f32 %v690_v57, %v669_v52 }
 0x50b   :  { %v696_v62 = vadd.f32 %v690_v57, %v672_v50  ;;  %v1636_v63 = vadd.f32 %v690_v57, %v675_v55  ;;  %v1641_v3 = vadd.f32 %v690_v57, %v678_v54  ;;  %v699_v4 = vadd.f32 %v690_v57, %v681_v2 }
 0x50c   :  { %v713_v0 = vrot.slane %v692_v58, %v1634_v56  ;;  %v717_v1 = vrot.slane %v693_v59, %v1634_v56  ;;  %v721_v41 = vrot.slane %v694_v60, %v1634_v56  ;;  %v725_v5 = vrot.slane %v695_v61, %v1634_v56 }
 0x50d   :  { %v729_v14 = vrot.slane %v696_v62, %v1634_v56  ;;  %v733_v16 = vrot.slane %v1636_v63, %v1634_v56  ;;  %v737_v18 = vrot.slane %v1641_v3, %v1634_v56  ;;  %v741_v20 = vrot.slane %v699_v4, %v1634_v56 }
 0x50e   :  { %v743_v6 = vsel %vm742_vm12, %v717_v1, %v713_v0 }
 0x50f   :  { %v745_v15 = vsel %vm744_vm13, %v721_v41, %v743_v6 }
 0x510   :  { %v747_v17 = vsel %vm746_vm14, %v725_v5, %v745_v15 }
 0x511   :  { %v749_v19 = vsel %vm748_vm15, %v729_v14, %v747_v17 }
 0x512   :  { %v751_v21 = vsel %vm750_vm0, %v733_v16, %v749_v19 }
 0x513   :  { %v753_v22 = vsel %vm752_vm2, %v737_v18, %v751_v21 }
 0x514   :  { %v755_v23 = vsel %vm754_vm3, %v741_v20, %v753_v22 }
 0x515   :  { %v757_v24 = vsel %vm92_vm1, %v755_v23, -inf }
 0x516   :  { %758 = vmax.xlane.f32.xlu1 %v757_v24 }
 0x59f   :  { %v759_v28 = vpop.xlane.xlu1 %758 }
 0x5a0   :  { %v764_v29 = vrot.slane %v759_v28, %v1608_v51  ;;  %v768_v30 = vrot.slane %v759_v28, %v767_v25  ;;  %v792_v31 = vrot.slane %v759_v28, %v791_v26  ;;  %v772_v33 = vrot.slane %v759_v28, %v771_v27 }
 0x5a1   :  { %v776_v9 = vrot.slane %v759_v28, %v775_v32  ;;  %v780_v37 = vrot.slane %v759_v28, %v779_v7  ;;  %v784_v42 = vrot.slane %v759_v28, %v783_v12  ;;  %v788_v46 = vrot.slane %v759_v28, %v787_v40 }
 0x5a2   :  { %v801_v34 = vsub.f32 %v692_v58, %v764_v29  ;;  %v802_v35 = vsub.f32 %v693_v59, %v768_v30  ;;  %v808_v8 = vsub.f32 %v699_v4, %v792_v31  ;;  %v803_v10 = vsub.f32 %v694_v60, %v772_v33 }
 0x5a3   :  { %v804_v38 = vsub.f32 %v695_v61, %v776_v9  ;;  %v805_v44 = vsub.f32 %v696_v62, %v780_v37  ;;  %v806_v47 = vsub.f32 %v1636_v63, %v784_v42  ;;  %v807_v50 = vsub.f32 %v1641_v3, %v788_v46 }
 0x5a4   :  { %v809_v36 = vmul.f32 1.442695, %v801_v34  ;;  %v811_v11 = vmul.f32 1.442695, %v802_v35  ;;  %v823_v13 = vmul.f32 1.442695, %v808_v8 }
 0x5a5   :  { %v813_v39 = vmul.f32 1.442695, %v803_v10  ;;  %v815_v45 = vmul.f32 1.442695, %v804_v38  ;;  %v817_v48 = vmul.f32 1.442695, %v805_v44 }
 0x5a6   :  { %1295 = vpow2.f32 %v809_v36  ;;  %v819_v52 = vmul.f32 1.442695, %v806_v47  ;;  %v821_v55 = vmul.f32 1.442695, %v807_v50 }
 0x5a7   :  { %1297 = vpow2.f32 %v811_v11 }
 0x5a8   :  { %1299 = vpow2.f32 %v823_v13 }
 0x5a9   :  { %1301 = vpow2.f32 %v813_v39 }
 0x5aa   :  { %1303 = vpow2.f32 %v815_v45 }
 0x5ab   :  { %1305 = vpow2.f32 %v817_v48 }
 0x5ac   :  { %1307 = vpow2.f32 %v819_v52 }
 0x5ad   :  { %1309 = vpow2.f32 %v821_v55 }
 0x5b3   :  { %v1296_v49 = vpop.eup %1295 }
 0x5b4   :  { %834 = vperm.xlu1 %1276, %v1296_v49   ;;  %v1298_v53 = vpop.eup %1297 }
 0x5b5   :  { %v1682_v54 = vpop.eup %1299 }
 0x5b6   :  { %v1302_v57 = vpop.eup %1301  ;;  %855 = vperm.xlu0 %1275, %v1682_v54  }
 0x5b7   :  { %v1304_v58 = vpop.eup %1303 }
 0x5b8   :  { %837 = vperm.xlu1 %1276, %v1298_v53   ;;  %v1306_v59 = vpop.eup %1305 }
 0x5b9   :  { %v1308_v60 = vpop.eup %1307 }
 0x5ba   :  { %v1685_v61 = vpop.eup %1309 }
 0x5bc   :  { %840 = vperm.xlu1 %1276, %v1302_v57  }
 0x5c0   :  { %843 = vperm.xlu1 %1276, %v1304_v58  }
 0x5c4   :  { %846 = vperm.xlu1 %1276, %v1306_v59  }
 0x5c8   :  { %849 = vperm.xlu1 %1276, %v1308_v60  }
 0x5cc   :  { %852 = vperm.xlu1 %1276, %v1685_v61  }
 0x62f   :  { %v835_v62 = vpop.permute.xlu1 %834 }
 0x630   :  { %v860_v4 = vrot.slane %v835_v62, %v1634_v56 }
 0x631   :  { %v856_v17 = vpop.permute.xlu0 %855 }
 0x632   :  { %v888_v23 = vrot.slane %v856_v17, %v1634_v56 }
 0x633   :  { %v838_v63 = vpop.permute.xlu1 %837 }
 0x634   :  { %v864_v2 = vrot.slane %v838_v63, %v1634_v56 }
 0x636   :  { %v889_v15 = vsel %vm742_vm12, %v864_v2, %v860_v4 }
 0x637   :  { %v841_v0 = vpop.permute.xlu1 %840 }
 0x638   :  { %v868_v3 = vrot.slane %v841_v0, %v1634_v56 }
 0x63a   :  { %v890_v18 = vsel %vm744_vm13, %v868_v3, %v889_v15 }
 0x63b   :  { %v844_v1 = vpop.permute.xlu1 %843 }
 0x63c   :  { %v872_v5 = vrot.slane %v844_v1, %v1634_v56 }
 0x63e   :  { %v891_v19 = vsel %vm746_vm14, %v872_v5, %v890_v18 }
 0x63f   :  { %v847_v41 = vpop.permute.xlu1 %846 }
 0x640   :  { %v876_v14 = vrot.slane %v847_v41, %v1634_v56 }
 0x642   :  { %v892_v21 = vsel %vm748_vm15, %v876_v14, %v891_v19 }
 0x643   :  { %v850_v6 = vpop.permute.xlu1 %849 }
 0x644   :  { %v880_v16 = vrot.slane %v850_v6, %v1634_v56 }
 0x646   :  { %v893_v24 = vsel %vm750_vm0, %v880_v16, %v892_v21 }
 0x647   :  { %v853_v20 = vpop.permute.xlu1 %852 }
 0x648   :  { %v884_v22 = vrot.slane %v853_v20, %v1634_v56 }
 0x64a   :  { %v894_v28 = vsel %vm752_vm2, %v884_v22, %v893_v24 }
 0x64b   :  { %v895_v29 = vsel %vm754_vm3, %v888_v23, %v894_v28 }
 0x64c   :  { %v897_v30 = vsel %vm92_vm1, %v895_v29, 0.0 }
 0x64d   :  { %898 = vadd.xlane.f32.xlu1 %v897_v30 }
 0x6d6   :  { %v899_v31 = vpop.xlane.xlu1 %898 }
 0x6d7   :  { %v904_v33 = vrot.slane %v899_v31, %v1608_v51  ;;  %v908_v34 = vrot.slane %v899_v31, %v767_v25  ;;  %v912_v35 = vrot.slane %v899_v31, %v771_v27  ;;  %v916_v36 = vrot.slane %v899_v31, %v775_v32 }
 0x6d8   :  { %v920_v8 = vrot.slane %v899_v31, %v779_v7  ;;  %v924_v51 = vrot.slane %v899_v31, %v783_v12  ;;  %v928_v27 = vrot.slane %v899_v31, %v787_v40  ;;  %v932_v32 = vrot.slane %v899_v31, %v791_v26 }
 0x6d9   :  { %1311 = vrcp.f32 %v904_v33 }
 0x6da   :  { %1313 = vrcp.f32 %v908_v34 }
 0x6db   :  { %1315 = vrcp.f32 %v912_v35 }
 0x6dc   :  { %1317 = vrcp.f32 %v916_v36 }
 0x6dd   :  { %1319 = vrcp.f32 %v920_v8 }
 0x6de   :  { %1321 = vrcp.f32 %v924_v51 }
 0x6df   :  { %1323 = vrcp.f32 %v928_v27 }
 0x6e0   :  { %1325 = vrcp.f32 %v932_v32 }
 0x6e6   :  { %v1312_v9 = vpop.eup %1311 }
 0x6e7   :  { %v942_v10 = vmul.f32 %v1312_v9, %v1296_v49  ;;  %v1314_v25 = vpop.eup %1313 }
 0x6e8   :  { %v944_v11 = vmul.f32 %v1314_v25, %v1298_v53  ;;  %v1316_v13 = vpop.eup %1315 }
 0x6e9   :  { %966 = vperm.xlu0 %1275, %v942_v10   ;;  %v946_v7 = vmul.f32 %v1316_v13, %v1302_v57  ;;  %v1318_v37 = vpop.eup %1317 }
 0x6ea   :  { %v948_v12 = vmul.f32 %v1318_v37, %v1304_v58  ;;  %v1320_v38 = vpop.eup %1319 }
 0x6eb   :  { %v950_v39 = vmul.f32 %v1320_v38, %v1306_v59  ;;  %v1322_v42 = vpop.eup %1321 }
 0x6ec   :  { %v952_v44 = vmul.f32 %v1322_v42, %v1308_v60  ;;  %v1324_v40 = vpop.eup %1323 }
 0x6ed   :  { %969 = vperm.xlu0 %1275, %v944_v11   ;;  %v954_v45 = vmul.f32 %v1324_v40, %v1685_v61  ;;  %v1326_v46 = vpop.eup %1325 }
 0x6ee   :  { %v956_v43 = vmul.f32 %v1326_v46, %v1682_v54 }
 0x6f1   :  { %972 = vperm.xlu0 %1275, %v946_v7  }
 0x6f5   :  { %975 = vperm.xlu0 %1275, %v948_v12  }
 0x6f9   :  { %978 = vperm.xlu0 %1275, %v950_v39  }
 0x6fd   :  { %981 = vperm.xlu0 %1275, %v952_v44  }
 0x701   :  { %984 = vperm.xlu0 %1275, %v954_v45  }
 0x705   :  { %987 = vperm.xlu0 %1275, %v956_v43  }
 0x764   :  { %v967_v26 = vpop.permute.xlu0 %966 }
 0x765   :  { %v992_v57 = vrot.slane %v967_v26, %v1634_v56 }
 0x768   :  { %v970_v47 = vpop.permute.xlu0 %969 }
 0x769   :  { %v996_v53 = vrot.slane %v970_v47, %v1634_v56 }
 0x76b   :  { %v1021_v54 = vsel %vm742_vm12, %v996_v53, %v992_v57 }
 0x76c   :  { %v973_v48 = vpop.permute.xlu0 %972 }
 0x76d   :  { %v1000_v55 = vrot.slane %v973_v48, %v1634_v56 }
 0x76f   :  { %v1022_v62 = vsel %vm744_vm13, %v1000_v55, %v1021_v54 }
 0x770   :  { %v976_v49 = vpop.permute.xlu0 %975 }
 0x771   :  { %v1004_v58 = vrot.slane %v976_v49, %v1634_v56 }
 0x773   :  { %v1023_v0 = vsel %vm746_vm14, %v1004_v58, %v1022_v62 }
 0x774   :  { %v979_v50 = vpop.permute.xlu0 %978 }
 0x775   :  { %v1008_v59 = vrot.slane %v979_v50, %v1634_v56 }
 0x777   :  { %v1024_v1 = vsel %vm748_vm15, %v1008_v59, %v1023_v0 }
 0x778   :  { %v982_v52 = vpop.permute.xlu0 %981 }
 0x779   :  { %v1012_v61 = vrot.slane %v982_v52, %v1634_v56 }
 0x77b   :  { %v1025_v2 = vsel %vm750_vm0, %v1012_v61, %v1024_v1 }
 0x77c   :  { %v985_v60 = vpop.permute.xlu0 %984 }
 0x77d   :  { %v1016_v63 = vrot.slane %v985_v60, %v1634_v56 }
 0x77f   :  { %v1026_v4 = vsel %vm752_vm2, %v1016_v63, %v1025_v2 }
 0x780   :  { %v988_v41 = vpop.permute.xlu0 %987 }
 0x781   :  { %v1020_v3 = vrot.slane %v988_v41, %v1634_v56 }
 0x783   :  { %v1027_v5 = vsel %vm754_vm3, %v1020_v3, %v1026_v4 }
 0x784   :  { %1214 = vmatmul.mubr.msk.f32.vlgmr.msra.gmra.mxu0 %vm92_vm1, %v1027_v5  ;;  %1103 = vst.msk [vmem:[%s1755_s16] sm:$0xff] %vm92_vm1, %v1027_v5 }
 0x844   :  { %v1096_v6 = vpop.f32.mrf.mxu0 }
 0x845   :  { %1327 = vtanh.f32 %v1096_v6 }
 0x846   :  { %v1215_v14 = vpop.f32.mrf.mxu0 }
 0x852   :  { %v1328_v15 = vpop.eup %1327 }
 0x853   :  { %1101 = vst.msk [vmem:[%s1754_s15] sm:$0xff] %vm379_vm11, %v1328_v15 }

</bundles_post_ra>
